<compile_context>
chip_gen: v7x
topology: tpu7x:2x2x1
jax: 0.10.0
libtpu: 0.0.40
codegen_flags: <defaults>
</compile_context>

<pallas_src>
import functools
import math

import jax
import jax.numpy as jnp
from jax import lax
from jax.experimental import pallas as pl
from jax.experimental.pallas import tpu as pltpu


def adagn_kernel(x_ref, w1_ref, w2_ref, o_ref, *, eps, inv_n, group_size):
    # x_ref : (rows, HWp)  activation slab, native dtype (rows = batch*channel)
    # w1_ref: (rows, 1)    fused per-row weight  gn_w * (1 + gamma_g)
    # w2_ref: (rows, 1)    fused per-row bias    gn_b * (1 + gamma_g) + beta_g

    # ---- pass 1: per-row sums (first streaming read of x, f32 accumulation) ----
    xs = x_ref[...].astype(jnp.float32)                   # (rows, HWp)
    s1 = jnp.sum(xs, axis=-1, keepdims=True)              # (rows, 1)
    s2 = jnp.sum(xs * xs, axis=-1, keepdims=True)         # (rows, 1)

    if group_size > 1:
        # Sum the per-row sums over each group of `group_size` consecutive rows
        # and broadcast back in one shot via a block-diagonal 0/1 membership
        # matrix on the (otherwise idle) MXU.  Only the tiny (rows, 1) stats
        # are touched; the (rows, HWp) slab is never re-laid out / reshaped.
        rows = s1.shape[0]
        ri = lax.broadcasted_iota(jnp.int32, (rows, rows), 0) // group_size
        ci = lax.broadcasted_iota(jnp.int32, (rows, rows), 1) // group_size
        gmat = (ri == ci).astype(jnp.float32)              # (rows, rows)
        s1 = jnp.dot(gmat, s1, preferred_element_type=jnp.float32)
        s2 = jnp.dot(gmat, s2, preferred_element_type=jnp.float32)

    # one-pass statistics (f32 + clamp; inputs here have no large DC offset)
    mean = s1 * inv_n                                      # per-row == per-group
    var = jnp.maximum(s2 * inv_n - mean * mean, 0.0)
    inv = lax.rsqrt(var + eps)

    # fold GN affine + (1 + gamma), beta into a single scale/shift per row:
    #   out = ((x - mean) * inv) * w1 + w2 = x * (inv*w1) + (w2 - mean*inv*w1)
    scale = inv * w1_ref[...]
    shift = w2_ref[...] - mean * scale

    # ---- pass 2: second streaming read of x, one fused mul+add+cast/element ----
    o_ref[...] = (x_ref[...].astype(jnp.float32) * scale + shift).astype(o_ref.dtype)


def _device_caps():
    """Generation-aware tiling knobs (conservative fall-backs if unknown)."""
    try:
        kind = jax.devices()[0].device_kind.lower()
    except Exception:  # pragma: no cover
        kind = ""
    is_v7 = "v7" in kind
    # chips where "parallel" grid axes are sharded across >1 TensorCore
    multi_core = is_v7 or ("v4" in kind) or ("v5p" in kind)
    # larger blocks on single-TC chips (amortize ~0.35us/step); slightly smaller
    # target on v7x whose VMEM is 64 MiB physical / 32 MiB scoped default.
    target_block_bytes = (4 << 20) if is_v7 else (6 << 20)
    vmem_cap = (48 << 20) if is_v7 else (64 << 20)
    return multi_core, target_block_bytes, vmem_cap


def adagn_pallas(x, t_emb, proj_w, proj_b, gn_w, gn_b, num_groups, eps=1e-6):
    """x: [B,C,H,W], t_emb: [B,E], proj_w: [2G,E], proj_b: [2G], gn_w/gn_b: [C].
    Matches AdaGN.forward (GroupNorm(eps=1e-6), then per-group (1+gamma), beta)."""
    B, C, H, W = x.shape
    G = num_groups
    assert C % G == 0
    cg = C // G                                   # channels per group
    HW = H * W
    itemsize = jnp.dtype(x.dtype).itemsize

    # ---------- tiny parameter algebra in plain XLA (one [B,E]@[E,2G] matmul) ----
    gb = (t_emb.astype(jnp.float32) @ proj_w.astype(jnp.float32).T
          + proj_b.astype(jnp.float32))                         # (B, 2G)
    gamma, beta = gb[:, :G], gb[:, G:]
    one_p_gamma_c = jnp.repeat(1.0 + gamma, cg, axis=1)         # (B, C)
    beta_c = jnp.repeat(beta, cg, axis=1)                       # (B, C)
    gnw = gn_w.astype(jnp.float32)[None, :]
    gnb = gn_b.astype(jnp.float32)[None, :]
    w1 = (one_p_gamma_c * gnw).reshape(B * C, 1)                # fused weight
    w2 = (one_p_gamma_c * gnb + beta_c).reshape(B * C, 1)       # fused bias

    # ---------- layout: (B*C, HW); lane-pad HW to a multiple of 128 ----------
    R = B * C
    x2 = x.reshape(R, HW)
    HWp = ((HW + 127) // 128) * 128
    if HWp != HW:
        # zero fill keeps sum / sum-of-squares unchanged; inv_n uses real HW.
        x2 = jnp.pad(x2, ((0, 0), (0, HWp - HW)))

    # Row blocks must hold whole groups (group channels are contiguous, and
    # C % cg == 0 so groups never straddle batch boundaries) and be a multiple
    # of the sublane packing for x's dtype.
    sub_pack = {1: 32, 2: 16}.get(itemsize, 8)
    row_unit = (cg * sub_pack) // math.gcd(cg, sub_pack)        # lcm(cg, sub_pack)
    Rp = ((R + row_unit - 1) // row_unit) * row_unit
    if Rp != R:
        x2 = jnp.pad(x2, ((0, Rp - R), (0, 0)))
        w1 = jnp.pad(w1, ((0, Rp - R), (0, 0)))
        w2 = jnp.pad(w2, ((0, Rp - R), (0, 0)))

    # ---------- generation-aware block sizing ----------
    multi_core, target_block_bytes, vmem_cap = _device_caps()
    total_units = Rp // row_unit
    unit_in_bytes = row_unit * HWp * itemsize
    # per-block VMEM ~ 2x double-buffered in + 2x out + ~2 f32 slab temporaries
    unit_vmem_bytes = row_unit * HWp * (4 * itemsize + 8)
    u = min(max(1, target_block_bytes // unit_in_bytes),
            max(1, (vmem_cap - (2 << 20)) // unit_vmem_bytes),
            total_units)
    if multi_core and total_units >= 2:
        u = min(u, total_units // 2)      # >=2 "parallel" steps -> feed both TCs
    u = max(u, 1)
    while total_units % u:                # block count must tile the rows evenly
        u -= 1
    rblk = u * row_unit
    n_blocks = total_units // u
    # TODO(synk): a single group whose (cg, HW) slab exceeds the VMEM budget
    # would need two-pass statistics with spatial sub-tiling; not implemented.

    kernel = functools.partial(
        adagn_kernel, eps=float(eps), inv_n=1.0 / float(cg * HW), group_size=cg)

    vmem_need = rblk * HWp * (4 * itemsize + 8) + (2 << 20)
    vmem_limit = int(min(vmem_cap, max(vmem_need, 32 << 20)))

    cost = pl.CostEstimate(               # pure HBM-bandwidth op
        flops=5 * B * C * HW,
        transcendentals=B * G,
        bytes_accessed=2 * B * C * HW * itemsize + 2 * B * C * 4)

    out = pl.pallas_call(
        kernel,
        out_shape=jax.ShapeDtypeStruct((Rp, HWp), x.dtype),
        grid_spec=pltpu.PrefetchScalarGridSpec(
            num_scalar_prefetch=0,
            grid=(n_blocks,),
            in_specs=[
                pl.BlockSpec((rblk, HWp), lambda i: (i, 0)),   # x slab
                pl.BlockSpec((rblk, 1), lambda i: (i, 0)),     # fused weight
                pl.BlockSpec((rblk, 1), lambda i: (i, 0)),     # fused bias
            ],
            out_specs=pl.BlockSpec((rblk, HWp), lambda i: (i, 0)),
        ),
        compiler_params=pltpu.CompilerParams(
            dimension_semantics=("parallel",),
            vmem_limit_bytes=vmem_limit),
        cost_estimate=cost,
    )(x2, w1, w2)

    if Rp != R or HWp != HW:
        out = out[:R, :HW]
    return out.reshape(B, C, H, W)


def adagn_reference(x, t_emb, proj_w, proj_b, gn_w, gn_b, num_groups, eps=1e-6):
    B, C, H, W = x.shape
    G = num_groups
    cg = C // G
    xg = x.reshape(B, G, cg * H * W).astype(jnp.float32)
    mean = xg.mean(-1, keepdims=True)
    var = ((xg - mean) ** 2).mean(-1, keepdims=True)
    xn = (xg - mean) / jnp.sqrt(var + eps)
    xn = xn.reshape(B, C, H, W) * gn_w[None, :, None, None] + gn_b[None, :, None, None]
    gb = t_emb @ proj_w.T + proj_b
    gamma, beta = gb[:, :G], gb[:, G:]
    xr = xn.reshape(B, G, cg, H, W)
    out = xr * (1.0 + gamma[:, :, None, None, None]) + beta[:, :, None, None, None]
    return out.reshape(B, C, H, W).astype(x.dtype)


if __name__ == "__main__":
    # Module config: channels=4, embed_dim=32 -> num_groups = min(32, 4) = 4
    B, C, H, W = 2, 4, 16, 16
    E = 32
    G = min(32, C)

    key = jax.random.PRNGKey(0)
    k1, k2, k3, k4 = jax.random.split(key, 4)

    x = jax.random.normal(k1, (B, C, H, W), dtype=jnp.float32)
    t_emb = jax.random.normal(k2, (B, E), dtype=jnp.float32)
    proj_w = 0.05 * jax.random.normal(k3, (2 * G, E), dtype=jnp.float32)
    proj_b = 0.01 * jax.random.normal(k4, (2 * G,), dtype=jnp.float32)
    gn_w = jnp.ones((C,), dtype=jnp.float32)   # nn.GroupNorm default affine init
    gn_b = jnp.zeros((C,), dtype=jnp.float32)

    out = jax.block_until_ready(adagn_pallas(x, t_emb, proj_w, proj_b, gn_w, gn_b, G))
    ref = adagn_reference(x, t_emb, proj_w, proj_b, gn_w, gn_b, G)
    assert out.shape == (B, C, H, W) and out.dtype == x.dtype
    assert jnp.allclose(out, ref, atol=1e-4, rtol=1e-4), "mismatch vs reference"

    # Secondary check: multi-channel groups (cg > 1) + non-128-multiple spatial
    # (exercises the MXU group-reduce path and the lane-padding path).
    B2, C2, G2, H2, W2 = 3, 8, 2, 5, 5
    kk = jax.random.split(key, 8)
    x2 = jax.random.normal(kk[4], (B2, C2, H2, W2), dtype=jnp.float32)
    t2 = jax.random.normal(kk[5], (B2, E), dtype=jnp.float32)
    pw2 = 0.05 * jax.random.normal(kk[6], (2 * G2, E), dtype=jnp.float32)
    pb2 = 0.01 * jax.random.normal(kk[7], (2 * G2,), dtype=jnp.float32)
    gw2 = 1.0 + 0.1 * jax.random.normal(kk[0], (C2,), dtype=jnp.float32)
    gb2 = 0.1 * jax.random.normal(kk[1], (C2,), dtype=jnp.float32)
    out2 = jax.block_until_ready(adagn_pallas(x2, t2, pw2, pb2, gw2, gb2, G2))
    ref2 = adagn_reference(x2, t2, pw2, pb2, gw2, gb2, G2)
    assert jnp.allclose(out2, ref2, atol=1e-4, rtol=1e-4), "mismatch (grouped/padded)"

    print("KERNEL_OK")
</pallas_src>

<mosaic_0001>
module attributes {stable_mosaic.version = 11 : i64} {
  func.func @adagn_kernel(%arg0: i32, %arg1: memref<8x256xf32, #tpu.memory_space<vmem>>, %arg2: memref<8x1xf32, #tpu.memory_space<vmem>>, %arg3: memref<8x1xf32, #tpu.memory_space<vmem>>, %arg4: memref<8x256xf32, #tpu.memory_space<vmem>>) attributes {dimension_semantics = [#tpu.dimension_semantics<parallel>], iteration_bounds = array<i64: 1>, scalar_prefetch = 0 : i64, scratch_operands = 0 : i64, tpu.core_type = #tpu.core_type<tc>, window_params = [{transform_indices = @transform_0, window_bounds = array<i64: 8, 256>}, {transform_indices = @transform_1, window_bounds = array<i64: 8, 1>}, {transform_indices = @transform_2, window_bounds = array<i64: 8, 1>}, {transform_indices = @transform_3, window_bounds = array<i64: 8, 256>}]} {
    %c0 = arith.constant 0 : index
    %c0_0 = arith.constant 0 : index
    %0 = vector.load %arg1[%c0, %c0_0] : memref<8x256xf32, #tpu.memory_space<vmem>>, vector<8x256xf32>
    %cst = arith.constant dense<0.000000e+00> : vector<8xf32>
    %1 = vector.multi_reduction <add>, %0, %cst [1] : vector<8x256xf32> to vector<8xf32>
    %2 = vector.shape_cast %1 : vector<8xf32> to vector<8x1xf32>
    %3 = arith.mulf %0, %0 : vector<8x256xf32>
    %cst_1 = arith.constant dense<0.000000e+00> : vector<8xf32>
    %4 = vector.multi_reduction <add>, %3, %cst_1 [1] : vector<8x256xf32> to vector<8xf32>
    %5 = vector.shape_cast %4 : vector<8xf32> to vector<8x1xf32>
    %cst_2 = arith.constant 3.906250e-03 : f32
    %6 = vector.broadcast %cst_2 : f32 to vector<8x1xf32>
    %7 = arith.mulf %2, %6 : vector<8x1xf32>
    %cst_3 = arith.constant 3.906250e-03 : f32
    %8 = vector.broadcast %cst_3 : f32 to vector<8x1xf32>
    %9 = arith.mulf %5, %8 : vector<8x1xf32>
    %10 = arith.mulf %7, %7 : vector<8x1xf32>
    %11 = arith.subf %9, %10 : vector<8x1xf32>
    %cst_4 = arith.constant 0.000000e+00 : f32
    %12 = vector.broadcast %cst_4 : f32 to vector<8x1xf32>
    %13 = arith.maximumf %11, %12 : vector<8x1xf32>
    %cst_5 = arith.constant 9.99999997E-7 : f32
    %14 = vector.broadcast %cst_5 : f32 to vector<8x1xf32>
    %15 = arith.addf %13, %14 : vector<8x1xf32>
    %16 = math.rsqrt %15 : vector<8x1xf32>
    %c0_6 = arith.constant 0 : index
    %c0_7 = arith.constant 0 : index
    %17 = vector.load %arg2[%c0_6, %c0_7] : memref<8x1xf32, #tpu.memory_space<vmem>>, vector<8x1xf32>
    %18 = arith.mulf %16, %17 : vector<8x1xf32>
    %c0_8 = arith.constant 0 : index
    %c0_9 = arith.constant 0 : index
    %19 = vector.load %arg3[%c0_8, %c0_9] : memref<8x1xf32, #tpu.memory_space<vmem>>, vector<8x1xf32>
    %20 = arith.mulf %7, %18 : vector<8x1xf32>
    %21 = arith.subf %19, %20 : vector<8x1xf32>
    %c0_10 = arith.constant 0 : index
    %c0_11 = arith.constant 0 : index
    %22 = vector.load %arg1[%c0_10, %c0_11] : memref<8x256xf32, #tpu.memory_space<vmem>>, vector<8x256xf32>
    %23 = vector.broadcast %18 : vector<8x1xf32> to vector<8x256xf32>
    %24 = arith.mulf %22, %23 : vector<8x256xf32>
    %25 = vector.broadcast %21 : vector<8x1xf32> to vector<8x256xf32>
    %26 = arith.addf %24, %25 : vector<8x256xf32>
    %c0_12 = arith.constant 0 : index
    %c0_13 = arith.constant 0 : index
    %27 = vector.load %arg4[%c0_12, %c0_13] : memref<8x256xf32, #tpu.memory_space<vmem>>, vector<8x256xf32>
    tpu.vector_store %arg4[%c0_12, %c0_13], %26 {strides = array<i32>} : memref<8x256xf32, #tpu.memory_space<vmem>>, vector<8x256xf32>,
    return
  }
  func.func @transform_0(%arg0: i32) -> (i32, i32) {
    %c0_i32 = arith.constant 0 : i32
    %c0_i32_0 = arith.constant 0 : i32
    return %arg0, %c0_i32 : i32, i32
  }
  func.func @transform_1(%arg0: i32) -> (i32, i32) {
    %c0_i32 = arith.constant 0 : i32
    %c0_i32_0 = arith.constant 0 : i32
    return %arg0, %c0_i32 : i32, i32
  }
  func.func @transform_2(%arg0: i32) -> (i32, i32) {
    %c0_i32 = arith.constant 0 : i32
    %c0_i32_0 = arith.constant 0 : i32
    return %arg0, %c0_i32 : i32, i32
  }
  func.func @transform_3(%arg0: i32) -> (i32, i32) {
    %c0_i32 = arith.constant 0 : i32
    %c0_i32_0 = arith.constant 0 : i32
    return %arg0, %c0_i32 : i32, i32
  }
}

</mosaic_0001>

<bundles_post_ra>
// kernel: tpu_custom_call.1
= control target key start
LH: loop header
LB: loop body
LE: loop exit
PB: predicated region body
PF: predicated region fallthrough
CT: control target
= control target key end

     0   :  { %s143_s0 = inlined_call_operand.vmem [shape: f32[8,256], index: 0, kind: input, shape index: {}]   ;;  %s144_s1 = inlined_call_operand.vmem [shape: f32[8,1], index: 1, kind: input, shape index: {}]   ;;  %s145_s2 = inlined_call_operand.vmem [shape: f32[8,1], index: 2, kind: input, shape index: {}]   ;;  %s146_s3 = inlined_call_operand.hbm [shape: f32[8,256], index: 3, kind: output, shape index: {}]  }
   0x1   :  { %v15_v0 = vld [vmem:[%s143_s0] sm:$0xff]  ;;  %v16_v1 = vld [vmem:[%s143_s0 + $0x8] sm:$0xff] }
   0x2   :  { %8 = vsyncpa [#allocation3], 0  ;;  %v17_v2 = vadd.f32 %v16_v1, %v15_v0  ;;  %v20_v3 = vmul.f32 %v15_v0, %v15_v0  ;;  %v21_v4 = vmul.f32 %v16_v1, %v16_v1  ;;  %v97_v6 = vmov 0   ;;  %v32_v15 = vld [vmem:[%s144_s1] sm:$0xff]  ;;  %s98_s19 = smov [#allocation2]  }
   0x3   :  { %69 = vset.pattern.permute.xlu1 %v97_v6  ;;  %70 = vset.pattern.permute.xlu0 %v97_v6  ;;  %v34_v18 = vld [vmem:[%s145_s2] sm:$0xff]  ;;  %s59_s20 = sshll.u32 %s98_s19, 4  ;;  %s60_s20 = int_to_ptr.vmem [resolvable:$true] %s59_s20 }
   0x4   :  { %18 = vadd.xlane.f32.xlu0 %v17_v2  ;;  %v22_v5 = vadd.f32 %v21_v4, %v20_v3  ;;  %s73_s1 = scalar_lea.vmem %s60_s20, 256  ;;  %p78_p1 = scmp.lt.s32.totalorder %s60_s20, %s60_s20 }
   0x5   :  { %p74_p0 = scmp.ne.s32.totalorder %s60_s20, %s73_s1  ;;  %p79_p2 = scmp.lt.s32.totalorder %s73_s1, %s73_s1 }
   0x7   :  { %p80_p3 = por %p79_p2, %p78_p1 }
   0x8   :  { %23 = vadd.xlane.f32.xlu0 %v22_v5 }
   0x9   :  { %p81_p4 = pnand %p80_p3, %p74_p0 }
  0x91   :  { %v19_v7 = vpop.xlane.xlu0 %18 }
  0x92   :  { %v25_v8 = vmul.f32 0.00390625, %v19_v7 }
  0x94   :  { %v27_v10 = vmul.f32 %v25_v8, %v25_v8 }
  0x95   :  { %v24_v9 = vpop.xlane.xlu0 %23 }
  0x96   :  { %v26_v11 = vmul.f32 0.00390625, %v24_v9 }
  0x98   :  { %v28_v12 = vsub.f32 %v26_v11, %v27_v10 }
  0x9a   :  { %v29_v13 = vmax.f32 %v28_v12, 0.0 }
  0x9c   :  { %v30_v14 = vadd.f32 1e-06, %v29_v13 }
  0x9e   :  { %71 = vrsqrt.f32 %v30_v14 }
  0xa8   :  { %v72_v16 = vpop.eup %71 }
  0xa9   :  { %v33_v17 = vmul.f32 %v72_v16, %v32_v15 }
  0xab   :  { %39 = vperm.xlu1 %69, %v33_v17   ;;  %v35_v19 = vmul.f32 %v33_v17, %v25_v8 }
  0xad   :  { %v36_v20 = vsub.f32 %v34_v18, %v35_v19 }
  0xaf   :  { %46 = vperm.xlu1 %69, %v36_v20  }
 0x12a   :  { %v40_v21 = vpop.permute.xlu1 %39 }
 0x12b   :  { %v42_v22 = vmul.f32 %v40_v21, %v15_v0  ;;  %v43_v23 = vmul.f32 %v40_v21, %v16_v1 }
 0x12e   :  { %v47_v24 = vpop.permute.xlu1 %46 }
 0x12f   :  { %v49_v25 = vadd.f32 %v47_v24, %v42_v22  ;;  %v50_v26 = vadd.f32 %v47_v24, %v43_v23 }
 0x131   :  { %51 = vst [vmem:[#allocation2] sm:$0xff] %v49_v25  ;;  %52 = vst [vmem:[#allocation2 + $0x8] sm:$0xff] %v50_v26 }
 0x132   :  { %84 = shalt.err (!%p81_p4)
}
 0x133   :  { %s85_s22 = scalar_lea.hbm %s146_s3, 256 }
 0x134   :  { %p86_p5 = scmp.ne.s32.totalorder %s146_s3, %s85_s22  ;;  %p89_p6 = scmp.lt.u32.totalorder %s85_s22, %s146_s3 }
 0x136   :  { %p91_p7 = pnand %p89_p6, %p86_p5 }
 0x138   :  { %94 = shalt.err (!%p91_p7)
}
 0x139   :  { %62 = dma.vmem_to_hbm [thread:$0]  %s60_s20, 256, %s146_s3, [#allocation3]  }
 0x13a   :  { %95 = dma.done.wait [#allocation3], 256  }
 0x13b   :  { %96 = vsyncadd [#allocation3], 4294967040 }
 0x13c   :  { %66 = vsyncpa [#allocation3], 1 }

</bundles_post_ra>
